<compile_context>
chip_gen: v5e
topology: v5e:2x2
jax: 0.10.0
libtpu: 0.0.40
codegen_flags: <defaults>
</compile_context>

<pallas_src>
import math
import jax
import jax.numpy as jnp
from jax.experimental import pallas as pl
from jax.experimental.pallas import tpu as pltpu

_INV_SQRT2 = 1.0 / math.sqrt(2.0)


def expert_layer_kernel(x_ref, w1_ref, b1_ref, w2_ref, b2_ref, g_ref, beta_ref, o_ref):
    # Keep an fp32 copy of the tile for residual / LayerNorm; feed the MXU bf16 operands
    # with fp32 accumulation (native MXU path on v5e/v6e/v7x).
    x = x_ref[...]
    x_f32 = x.astype(jnp.float32)                                   # (tm, D) residual

    # fc1: bf16 x bf16 -> fp32 accumulate
    h = jnp.dot(x.astype(jnp.bfloat16), w1_ref[...],
                preferred_element_type=jnp.float32)
    h = h + b1_ref[...].astype(jnp.float32)                         # (tm, H)

    # exact (erf-based) GELU in fp32 -- matches PyTorch F.gelu default
    h = 0.5 * h * (1.0 + jax.lax.erf(h * _INV_SQRT2))

    # dropout == identity at inference time
    # fc2: bf16 x bf16 -> fp32 accumulate
    y = jnp.dot(h.astype(jnp.bfloat16), w2_ref[...],
                preferred_element_type=jnp.float32)
    y = y + b2_ref[...].astype(jnp.float32)                         # (tm, D)

    # residual add + LayerNorm over last dim (eps = 1e-5, PyTorch default),
    # gamma folded into the rsqrt scale.
    y = y + x_f32
    mean = jnp.mean(y, axis=-1, keepdims=True)
    centered = y - mean
    var = jnp.mean(centered * centered, axis=-1, keepdims=True)
    scale = g_ref[...].astype(jnp.float32) * jax.lax.rsqrt(var + 1e-5)
    o_ref[...] = (centered * scale + beta_ref[...].astype(jnp.float32)).astype(o_ref.dtype)


def _round_up(n, m):
    return ((n + m - 1) // m) * m


def expert_layer_forward(x, w1, b1, w2, b2, gamma, beta, *, tm=256):
    """x: (..., D). Returns same shape/dtype. Entire forward fused in one Pallas kernel."""
    orig_shape = x.shape
    D = orig_shape[-1]
    H = w1.shape[1]
    assert w1.shape == (D, H) and w2.shape == (H, D)

    x2d = x.reshape(-1, D)
    M = x2d.shape[0]

    # Row tile: multiple of 8 (sublane), no larger than the (8-rounded) token count.
    tm_eff = max(8, min(_round_up(tm, 8), _round_up(M, 8)))
    Mp = _round_up(M, tm_eff)
    if Mp != M:
        # Pad with zeros; padded rows produce finite garbage and are sliced off below.
        x2d = jnp.pad(x2d, ((0, Mp - M), (0, 0)))

    # Feed the MXU bf16 weights (fp32 accumulation inside the kernel); halves weight VMEM.
    w1_c = w1.astype(jnp.bfloat16)
    w2_c = w2.astype(jnp.bfloat16)

    out_dtype = x.dtype
    itemsize_x = jnp.dtype(x2d.dtype).itemsize
    itemsize_o = jnp.dtype(out_dtype).itemsize
    # VMEM budget: single-buffered bf16 weights + small fp32 params,
    # double-buffered x/out tiles, headroom for in-kernel fp32 temporaries.
    vmem_needed = (2 * D * H) * 2 + (H + 3 * D) * 4
    vmem_needed += 2 * tm_eff * D * itemsize_x + 2 * tm_eff * D * itemsize_o
    vmem_needed += 4 * tm_eff * max(D, H)
    vmem_limit = int(min(max(2 * vmem_needed, 32 << 20), 60 << 20))
    # TODO(synk): for very large D*H (weights not VMEM-resident, e.g. v7x 64 MiB), add an
    # H reduction grid axis ('arbitrary') with an fp32 accumulator finalized via pl.when.

    grid = (Mp // tm_eff,)

    def _call(use_buffered):
        const_kwargs = dict(pipeline_mode=pl.Buffered(1)) if use_buffered else {}

        def const_spec(shape):
            # Constant across the grid -> single-buffer (no pointless double-buffering).
            return pl.BlockSpec(shape, lambda i: (0, 0), **const_kwargs)

        return pl.pallas_call(
            expert_layer_kernel,
            out_shape=jax.ShapeDtypeStruct((Mp, D), out_dtype),
            grid_spec=pltpu.PrefetchScalarGridSpec(
                num_scalar_prefetch=0,
                grid=grid,
                in_specs=[
                    pl.BlockSpec((tm_eff, D), lambda i: (i, 0)),    # x tile
                    const_spec((D, H)),                             # w1 (resident, bf16)
                    const_spec((1, H)),                             # b1
                    const_spec((H, D)),                             # w2 (resident, bf16)
                    const_spec((1, D)),                             # b2
                    const_spec((1, D)),                             # ln gamma
                    const_spec((1, D)),                             # ln beta
                ],
                out_specs=pl.BlockSpec((tm_eff, D), lambda i: (i, 0)),
            ),
            compiler_params=pltpu.CompilerParams(
                dimension_semantics=("parallel",),
                vmem_limit_bytes=vmem_limit,
            ),
        )(x2d, w1_c, b1, w2_c, b2, gamma, beta)

    if hasattr(pl, "Buffered"):
        try:
            out = _call(True)
        except Exception:
            # Fallback for JAX versions without pipeline_mode / Buffered(1) support.
            out = _call(False)
    else:
        out = _call(False)

    if Mp != M:
        out = out[:M]
    return out.reshape(orig_shape)


def init_expert_params(key, input_dim, hidden_dim, output_dim, dtype=jnp.float32):
    """Deterministic init matching the PyTorch module: xavier_uniform_ weights,
    nn.Linear default uniform biases, LayerNorm gamma=1, beta=0.
    Weights stored transposed: (in, out)."""
    k1, k2, k3, k4 = jax.random.split(key, 4)

    def xavier(k, fan_in, fan_out):
        bound = math.sqrt(6.0 / (fan_in + fan_out))
        return jax.random.uniform(k, (fan_in, fan_out), dtype, -bound, bound)

    def bias(k, fan_in, n):
        bound = 1.0 / math.sqrt(fan_in)
        return jax.random.uniform(k, (1, n), dtype, -bound, bound)

    w1 = xavier(k1, input_dim, hidden_dim)
    b1 = bias(k2, input_dim, hidden_dim)
    w2 = xavier(k3, hidden_dim, output_dim)
    b2 = bias(k4, hidden_dim, output_dim)
    gamma = jnp.ones((1, output_dim), dtype)
    beta = jnp.zeros((1, output_dim), dtype)
    return w1, b1, w2, b2, gamma, beta


def reference_forward(x, w1, b1, w2, b2, gamma, beta, *, matmul_dtype=jnp.float32):
    """Pure-JAX reference of the PyTorch forward (eval mode).
    matmul_dtype lets the reference mirror the kernel's bf16-matmul / fp32-accumulate path."""
    residual = x.astype(jnp.float32)
    h = jnp.dot(x.astype(matmul_dtype), w1.astype(matmul_dtype),
                preferred_element_type=jnp.float32) + b1.astype(jnp.float32)
    h = 0.5 * h * (1.0 + jax.lax.erf(h * _INV_SQRT2))
    y = jnp.dot(h.astype(matmul_dtype), w2.astype(matmul_dtype),
                preferred_element_type=jnp.float32) + b2.astype(jnp.float32)
    y = y + residual
    mean = jnp.mean(y, axis=-1, keepdims=True)
    var = jnp.mean((y - mean) ** 2, axis=-1, keepdims=True)
    out = (y - mean) * jax.lax.rsqrt(var + 1e-5) * gamma.astype(jnp.float32) \
          + beta.astype(jnp.float32)
    return out.astype(x.dtype)


if __name__ == "__main__":
    # Small shapes consistent with the module: residual add requires output_dim == input_dim.
    batch, seq = 2, 8
    input_dim, hidden_dim, output_dim = 32, 64, 32

    key = jax.random.PRNGKey(0)
    kx, kp = jax.random.split(key)
    x = jax.random.normal(kx, (batch, seq, input_dim), jnp.float32)
    params = init_expert_params(kp, input_dim, hidden_dim, output_dim)

    out = expert_layer_forward(x, *params)   # tm=256 default, clamped to token count
    out = jax.block_until_ready(out)

    ref_bf16 = reference_forward(x, *params, matmul_dtype=jnp.bfloat16)  # matched precision
    ref_f32 = reference_forward(x, *params, matmul_dtype=jnp.float32)    # exact math

    assert out.shape == x.shape
    assert bool(jnp.all(jnp.isfinite(out)))
    assert jnp.allclose(out, ref_bf16, atol=1e-2, rtol=1e-2), \
        f"mismatch vs bf16-path reference, max abs diff {float(jnp.max(jnp.abs(out - ref_bf16)))}"
    assert jnp.allclose(out, ref_f32, atol=5e-2, rtol=5e-2), \
        f"mismatch vs fp32 reference, max abs diff {float(jnp.max(jnp.abs(out - ref_f32)))}"

    print("KERNEL_OK")
</pallas_src>

<mosaic_0001>
module attributes {stable_mosaic.version = 11 : i64} {
  func.func @expert_layer_kernel(%arg0: i32, %arg1: memref<16x32xf32, #tpu.memory_space<vmem>>, %arg2: memref<32x64xbf16, #tpu.memory_space<vmem>>, %arg3: memref<1x64xf32, #tpu.memory_space<vmem>>, %arg4: memref<64x32xbf16, #tpu.memory_space<vmem>>, %arg5: memref<1x32xf32, #tpu.memory_space<vmem>>, %arg6: memref<1x32xf32, #tpu.memory_space<vmem>>, %arg7: memref<1x32xf32, #tpu.memory_space<vmem>>, %arg8: memref<16x32xf32, #tpu.memory_space<vmem>>) attributes {dimension_semantics = [#tpu.dimension_semantics<parallel>], iteration_bounds = array<i64: 1>, scalar_prefetch = 0 : i64, scratch_operands = 0 : i64, tpu.core_type = #tpu.core_type<tc>, window_params = [{transform_indices = @transform_0, window_bounds = array<i64: 16, 32>}, {pipeline_mode = #tpu.pipeline_mode<synchronous>, transform_indices = @transform_1, window_bounds = array<i64: 32, 64>}, {pipeline_mode = #tpu.pipeline_mode<synchronous>, transform_indices = @transform_2, window_bounds = array<i64: 1, 64>}, {pipeline_mode = #tpu.pipeline_mode<synchronous>, transform_indices = @transform_3, window_bounds = array<i64: 64, 32>}, {pipeline_mode = #tpu.pipeline_mode<synchronous>, transform_indices = @transform_4, window_bounds = array<i64: 1, 32>}, {pipeline_mode = #tpu.pipeline_mode<synchronous>, transform_indices = @transform_5, window_bounds = array<i64: 1, 32>}, {pipeline_mode = #tpu.pipeline_mode<synchronous>, transform_indices = @transform_6, window_bounds = array<i64: 1, 32>}, {transform_indices = @transform_7, window_bounds = array<i64: 16, 32>}]} {
    %c0 = arith.constant 0 : index
    %c0_0 = arith.constant 0 : index
    %0 = vector.load %arg1[%c0, %c0_0] : memref<16x32xf32, #tpu.memory_space<vmem>>, vector<16x32xf32>
    %1 = arith.truncf %0 : vector<16x32xf32> to vector<16x32xbf16>
    %c0_1 = arith.constant 0 : index
    %c0_2 = arith.constant 0 : index
    %2 = vector.load %arg2[%c0_1, %c0_2] : memref<32x64xbf16, #tpu.memory_space<vmem>>, vector<32x64xbf16>
    %cst = arith.constant dense<0.000000e+00> : vector<16x64xf32>
    %3 = tpu.matmul %1, %2, %cst {dimension_numbers = #tpu.dot_dimension_numbers<[1], [0], [0], [1], [0, 0, 1, 1], [], []>} : vector<16x32xbf16>, vector<32x64xbf16>, vector<16x64xf32> -> vector<16x64xf32>
    %c0_3 = arith.constant 0 : index
    %c0_4 = arith.constant 0 : index
    %4 = vector.load %arg3[%c0_3, %c0_4] : memref<1x64xf32, #tpu.memory_space<vmem>>, vector<1x64xf32>
    %5 = vector.broadcast %4 : vector<1x64xf32> to vector<16x64xf32>
    %6 = arith.addf %3, %5 : vector<16x64xf32>
    %cst_5 = arith.constant 5.000000e-01 : f32
    %7 = vector.broadcast %cst_5 : f32 to vector<16x64xf32>
    %8 = arith.mulf %7, %6 : vector<16x64xf32>
    %cst_6 = arith.constant 0.707106769 : f32
    %9 = vector.broadcast %cst_6 : f32 to vector<16x64xf32>
    %10 = arith.mulf %6, %9 : vector<16x64xf32>
    %11 = math.erf %10 : vector<16x64xf32>
    %cst_7 = arith.constant 1.000000e+00 : f32
    %12 = vector.broadcast %cst_7 : f32 to vector<16x64xf32>
    %13 = arith.addf %12, %11 : vector<16x64xf32>
    %14 = arith.mulf %8, %13 : vector<16x64xf32>
    %15 = arith.truncf %14 : vector<16x64xf32> to vector<16x64xbf16>
    %c0_8 = arith.constant 0 : index
    %c0_9 = arith.constant 0 : index
    %16 = vector.load %arg4[%c0_8, %c0_9] : memref<64x32xbf16, #tpu.memory_space<vmem>>, vector<64x32xbf16>
    %cst_10 = arith.constant dense<0.000000e+00> : vector<16x32xf32>
    %17 = tpu.matmul %15, %16, %cst_10 {dimension_numbers = #tpu.dot_dimension_numbers<[1], [0], [0], [1], [0, 0, 1, 1], [], []>} : vector<16x64xbf16>, vector<64x32xbf16>, vector<16x32xf32> -> vector<16x32xf32>
    %c0_11 = arith.constant 0 : index
    %c0_12 = arith.constant 0 : index
    %18 = vector.load %arg5[%c0_11, %c0_12] : memref<1x32xf32, #tpu.memory_space<vmem>>, vector<1x32xf32>
    %19 = vector.broadcast %18 : vector<1x32xf32> to vector<16x32xf32>
    %20 = arith.addf %17, %19 : vector<16x32xf32>
    %21 = arith.addf %20, %0 : vector<16x32xf32>
    %cst_13 = arith.constant dense<0.000000e+00> : vector<16xf32>
    %22 = vector.multi_reduction <add>, %21, %cst_13 [1] : vector<16x32xf32> to vector<16xf32>
    %23 = vector.shape_cast %22 : vector<16xf32> to vector<16x1xf32>
    %cst_14 = arith.constant 3.200000e+01 : f32
    %24 = vector.broadcast %cst_14 : f32 to vector<16x1xf32>
    %25 = arith.divf %23, %24 : vector<16x1xf32>
    %26 = vector.broadcast %25 : vector<16x1xf32> to vector<16x32xf32>
    %27 = arith.subf %21, %26 : vector<16x32xf32>
    %28 = arith.mulf %27, %27 : vector<16x32xf32>
    %cst_15 = arith.constant dense<0.000000e+00> : vector<16xf32>
    %29 = vector.multi_reduction <add>, %28, %cst_15 [1] : vector<16x32xf32> to vector<16xf32>
    %30 = vector.shape_cast %29 : vector<16xf32> to vector<16x1xf32>
    %cst_16 = arith.constant 3.200000e+01 : f32
    %31 = vector.broadcast %cst_16 : f32 to vector<16x1xf32>
    %32 = arith.divf %30, %31 : vector<16x1xf32>
    %c0_17 = arith.constant 0 : index
    %c0_18 = arith.constant 0 : index
    %33 = vector.load %arg6[%c0_17, %c0_18] : memref<1x32xf32, #tpu.memory_space<vmem>>, vector<1x32xf32>
    %cst_19 = arith.constant 9.99999974E-6 : f32
    %34 = vector.broadcast %cst_19 : f32 to vector<16x1xf32>
    %35 = arith.addf %32, %34 : vector<16x1xf32>
    %36 = math.rsqrt %35 : vector<16x1xf32>
    %37 = vector.broadcast %33 : vector<1x32xf32> to vector<16x32xf32>
    %38 = vector.broadcast %36 : vector<16x1xf32> to vector<16x32xf32>
    %39 = arith.mulf %37, %38 : vector<16x32xf32>
    %40 = arith.mulf %27, %39 : vector<16x32xf32>
    %c0_20 = arith.constant 0 : index
    %c0_21 = arith.constant 0 : index
    %41 = vector.load %arg7[%c0_20, %c0_21] : memref<1x32xf32, #tpu.memory_space<vmem>>, vector<1x32xf32>
    %42 = vector.broadcast %41 : vector<1x32xf32> to vector<16x32xf32>
    %43 = arith.addf %40, %42 : vector<16x32xf32>
    %c0_22 = arith.constant 0 : index
    %c0_23 = arith.constant 0 : index
    %44 = vector.load %arg8[%c0_22, %c0_23] : memref<16x32xf32, #tpu.memory_space<vmem>>, vector<16x32xf32>
    tpu.vector_store %arg8[%c0_22, %c0_23], %43 {strides = array<i32>} : memref<16x32xf32, #tpu.memory_space<vmem>>, vector<16x32xf32>,
    return
  }
  func.func @transform_0(%arg0: i32) -> (i32, i32) {
    %c0_i32 = arith.constant 0 : i32
    %c0_i32_0 = arith.constant 0 : i32
    return %arg0, %c0_i32 : i32, i32
  }
  func.func @transform_1(%arg0: i32) -> (i32, i32) {
    %c0_i32 = arith.constant 0 : i32
    %c0_i32_0 = arith.constant 0 : i32
    %c0_i32_1 = arith.constant 0 : i32
    return %c0_i32, %c0_i32_0 : i32, i32
  }
  func.func @transform_2(%arg0: i32) -> (i32, i32) {
    %c0_i32 = arith.constant 0 : i32
    %c0_i32_0 = arith.constant 0 : i32
    %c0_i32_1 = arith.constant 0 : i32
    return %c0_i32, %c0_i32_0 : i32, i32
  }
  func.func @transform_3(%arg0: i32) -> (i32, i32) {
    %c0_i32 = arith.constant 0 : i32
    %c0_i32_0 = arith.constant 0 : i32
    %c0_i32_1 = arith.constant 0 : i32
    return %c0_i32, %c0_i32_0 : i32, i32
  }
  func.func @transform_4(%arg0: i32) -> (i32, i32) {
    %c0_i32 = arith.constant 0 : i32
    %c0_i32_0 = arith.constant 0 : i32
    %c0_i32_1 = arith.constant 0 : i32
    return %c0_i32, %c0_i32_0 : i32, i32
  }
  func.func @transform_5(%arg0: i32) -> (i32, i32) {
    %c0_i32 = arith.constant 0 : i32
    %c0_i32_0 = arith.constant 0 : i32
    %c0_i32_1 = arith.constant 0 : i32
    return %c0_i32, %c0_i32_0 : i32, i32
  }
  func.func @transform_6(%arg0: i32) -> (i32, i32) {
    %c0_i32 = arith.constant 0 : i32
    %c0_i32_0 = arith.constant 0 : i32
    %c0_i32_1 = arith.constant 0 : i32
    return %c0_i32, %c0_i32_0 : i32, i32
  }
  func.func @transform_7(%arg0: i32) -> (i32, i32) {
    %c0_i32 = arith.constant 0 : i32
    %c0_i32_0 = arith.constant 0 : i32
    return %arg0, %c0_i32 : i32, i32
  }
}

module attributes {stable_mosaic.version = 11 : i64} {
  func.func @expert_layer_kernel(%arg0: i32, %arg1: memref<16x32xf32, #tpu.memory_space<vmem>>, %arg2: memref<32x64xbf16, #tpu.memory_space<vmem>>, %arg3: memref<1x64xf32, #tpu.memory_space<vmem>>, %arg4: memref<64x32xbf16, #tpu.memory_space<vmem>>, %arg5: memref<1x32xf32, #tpu.memory_space<vmem>>, %arg6: memref<1x32xf32, #tpu.memory_space<vmem>>, %arg7: memref<1x32xf32, #tpu.memory_space<vmem>>, %arg8: memref<16x32xf32, #tpu.memory_space<vmem>>) attributes {dimension_semantics = [#tpu.dimension_semantics<parallel>], iteration_bounds = array<i64: 1>, scalar_prefetch = 0 : i64, scratch_operands = 0 : i64, tpu.core_type = #tpu.core_type<tc>, window_params = [{transform_indices = @transform_0, window_bounds = array<i64: 16, 32>}, {pipeline_mode = #tpu.pipeline_mode<synchronous>, transform_indices = @transform_1, window_bounds = array<i64: 32, 64>}, {pipeline_mode = #tpu.pipeline_mode<synchronous>, transform_indices = @transform_2, window_bounds = array<i64: 1, 64>}, {pipeline_mode = #tpu.pipeline_mode<synchronous>, transform_indices = @transform_3, window_bounds = array<i64: 64, 32>}, {pipeline_mode = #tpu.pipeline_mode<synchronous>, transform_indices = @transform_4, window_bounds = array<i64: 1, 32>}, {pipeline_mode = #tpu.pipeline_mode<synchronous>, transform_indices = @transform_5, window_bounds = array<i64: 1, 32>}, {pipeline_mode = #tpu.pipeline_mode<synchronous>, transform_indices = @transform_6, window_bounds = array<i64: 1, 32>}, {transform_indices = @transform_7, window_bounds = array<i64: 16, 32>}]} {
    %c0 = arith.constant 0 : index
    %c0_0 = arith.constant 0 : index
    %0 = vector.load %arg1[%c0, %c0_0] : memref<16x32xf32, #tpu.memory_space<vmem>>, vector<16x32xf32>
    %1 = arith.truncf %0 : vector<16x32xf32> to vector<16x32xbf16>
    %c0_1 = arith.constant 0 : index
    %c0_2 = arith.constant 0 : index
    %2 = vector.load %arg2[%c0_1, %c0_2] : memref<32x64xbf16, #tpu.memory_space<vmem>>, vector<32x64xbf16>
    %cst = arith.constant dense<0.000000e+00> : vector<16x64xf32>
    %3 = tpu.matmul %1, %2, %cst {dimension_numbers = #tpu.dot_dimension_numbers<[1], [0], [0], [1], [0, 0, 1, 1], [], []>} : vector<16x32xbf16>, vector<32x64xbf16>, vector<16x64xf32> -> vector<16x64xf32>
    %c0_3 = arith.constant 0 : index
    %c0_4 = arith.constant 0 : index
    %4 = vector.load %arg3[%c0_3, %c0_4] : memref<1x64xf32, #tpu.memory_space<vmem>>, vector<1x64xf32>
    %5 = vector.broadcast %4 : vector<1x64xf32> to vector<16x64xf32>
    %6 = arith.addf %3, %5 : vector<16x64xf32>
    %cst_5 = arith.constant 5.000000e-01 : f32
    %7 = vector.broadcast %cst_5 : f32 to vector<16x64xf32>
    %8 = arith.mulf %7, %6 : vector<16x64xf32>
    %cst_6 = arith.constant 0.707106769 : f32
    %9 = vector.broadcast %cst_6 : f32 to vector<16x64xf32>
    %10 = arith.mulf %6, %9 : vector<16x64xf32>
    %11 = math.erf %10 : vector<16x64xf32>
    %cst_7 = arith.constant 1.000000e+00 : f32
    %12 = vector.broadcast %cst_7 : f32 to vector<16x64xf32>
    %13 = arith.addf %12, %11 : vector<16x64xf32>
    %14 = arith.mulf %8, %13 : vector<16x64xf32>
    %15 = arith.truncf %14 : vector<16x64xf32> to vector<16x64xbf16>
    %c0_8 = arith.constant 0 : index
    %c0_9 = arith.constant 0 : index
    %16 = vector.load %arg4[%c0_8, %c0_9] : memref<64x32xbf16, #tpu.memory_space<vmem>>, vector<64x32xbf16>
    %cst_10 = arith.constant dense<0.000000e+00> : vector<16x32xf32>
    %17 = tpu.matmul %15, %16, %cst_10 {dimension_numbers = #tpu.dot_dimension_numbers<[1], [0], [0], [1], [0, 0, 1, 1], [], []>} : vector<16x64xbf16>, vector<64x32xbf16>, vector<16x32xf32> -> vector<16x32xf32>
    %c0_11 = arith.constant 0 : index
    %c0_12 = arith.constant 0 : index
    %18 = vector.load %arg5[%c0_11, %c0_12] : memref<1x32xf32, #tpu.memory_space<vmem>>, vector<1x32xf32>
    %19 = vector.broadcast %18 : vector<1x32xf32> to vector<16x32xf32>
    %20 = arith.addf %17, %19 : vector<16x32xf32>
    %21 = arith.addf %20, %0 : vector<16x32xf32>
    %cst_13 = arith.constant dense<0.000000e+00> : vector<16xf32>
    %22 = vector.multi_reduction <add>, %21, %cst_13 [1] : vector<16x32xf32> to vector<16xf32>
    %23 = vector.shape_cast %22 : vector<16xf32> to vector<16x1xf32>
    %cst_14 = arith.constant 3.200000e+01 : f32
    %24 = vector.broadcast %cst_14 : f32 to vector<16x1xf32>
    %25 = arith.divf %23, %24 : vector<16x1xf32>
    %26 = vector.broadcast %25 : vector<16x1xf32> to vector<16x32xf32>
    %27 = arith.subf %21, %26 : vector<16x32xf32>
    %28 = arith.mulf %27, %27 : vector<16x32xf32>
    %cst_15 = arith.constant dense<0.000000e+00> : vector<16xf32>
    %29 = vector.multi_reduction <add>, %28, %cst_15 [1] : vector<16x32xf32> to vector<16xf32>
    %30 = vector.shape_cast %29 : vector<16xf32> to vector<16x1xf32>
    %cst_16 = arith.constant 3.200000e+01 : f32
    %31 = vector.broadcast %cst_16 : f32 to vector<16x1xf32>
    %32 = arith.divf %30, %31 : vector<16x1xf32>
    %c0_17 = arith.constant 0 : index
    %c0_18 = arith.constant 0 : index
    %33 = vector.load %arg6[%c0_17, %c0_18] : memref<1x32xf32, #tpu.memory_space<vmem>>, vector<1x32xf32>
    %cst_19 = arith.constant 9.99999974E-6 : f32
    %34 = vector.broadcast %cst_19 : f32 to vector<16x1xf32>
    %35 = arith.addf %32, %34 : vector<16x1xf32>
    %36 = math.rsqrt %35 : vector<16x1xf32>
    %37 = vector.broadcast %33 : vector<1x32xf32> to vector<16x32xf32>
    %38 = vector.broadcast %36 : vector<16x1xf32> to vector<16x32xf32>
    %39 = arith.mulf %37, %38 : vector<16x32xf32>
    %40 = arith.mulf %27, %39 : vector<16x32xf32>
    %c0_20 = arith.constant 0 : index
    %c0_21 = arith.constant 0 : index
    %41 = vector.load %arg7[%c0_20, %c0_21] : memref<1x32xf32, #tpu.memory_space<vmem>>, vector<1x32xf32>
    %42 = vector.broadcast %41 : vector<1x32xf32> to vector<16x32xf32>
    %43 = arith.addf %40, %42 : vector<16x32xf32>
    %c0_22 = arith.constant 0 : index
    %c0_23 = arith.constant 0 : index
    %44 = vector.load %arg8[%c0_22, %c0_23] : memref<16x32xf32, #tpu.memory_space<vmem>>, vector<16x32xf32>
    tpu.vector_store %arg8[%c0_22, %c0_23], %43 {strides = array<i32>} : memref<16x32xf32, #tpu.memory_space<vmem>>, vector<16x32xf32>,
    return
  }
  func.func @transform_0(%arg0: i32) -> (i32, i32) {
    %c0_i32 = arith.constant 0 : i32
    %c0_i32_0 = arith.constant 0 : i32
    return %arg0, %c0_i32 : i32, i32
  }
  func.func @transform_1(%arg0: i32) -> (i32, i32) {
    %c0_i32 = arith.constant 0 : i32
    %c0_i32_0 = arith.constant 0 : i32
    %c0_i32_1 = arith.constant 0 : i32
    return %c0_i32, %c0_i32_0 : i32, i32
  }
  func.func @transform_2(%arg0: i32) -> (i32, i32) {
    %c0_i32 = arith.constant 0 : i32
    %c0_i32_0 = arith.constant 0 : i32
    %c0_i32_1 = arith.constant 0 : i32
    return %c0_i32, %c0_i32_0 : i32, i32
  }
  func.func @transform_3(%arg0: i32) -> (i32, i32) {
    %c0_i32 = arith.constant 0 : i32
    %c0_i32_0 = arith.constant 0 : i32
    %c0_i32_1 = arith.constant 0 : i32
    return %c0_i32, %c0_i32_0 : i32, i32
  }
  func.func @transform_4(%arg0: i32) -> (i32, i32) {
    %c0_i32 = arith.constant 0 : i32
    %c0_i32_0 = arith.constant 0 : i32
    %c0_i32_1 = arith.constant 0 : i32
    return %c0_i32, %c0_i32_0 : i32, i32
  }
  func.func @transform_5(%arg0: i32) -> (i32, i32) {
    %c0_i32 = arith.constant 0 : i32
    %c0_i32_0 = arith.constant 0 : i32
    %c0_i32_1 = arith.constant 0 : i32
    return %c0_i32, %c0_i32_0 : i32, i32
  }
  func.func @transform_6(%arg0: i32) -> (i32, i32) {
    %c0_i32 = arith.constant 0 : i32
    %c0_i32_0 = arith.constant 0 : i32
    %c0_i32_1 = arith.constant 0 : i32
    return %c0_i32, %c0_i32_0 : i32, i32
  }
  func.func @transform_7(%arg0: i32) -> (i32, i32) {
    %c0_i32 = arith.constant 0 : i32
    %c0_i32_0 = arith.constant 0 : i32
    return %arg0, %c0_i32 : i32, i32
  }
}

</mosaic_0001>

<bundles_post_ra>
// kernel: tpu_custom_call.1
= control target key start
LH: loop header
LB: loop body
LE: loop exit
PB: predicated region body
PF: predicated region fallthrough
CT: control target
= control target key end

     0   :  { %s491_s0 = inlined_call_operand.vmem [shape: f32[16,32], index: 0, kind: input, shape index: {}]   ;;  %s492_s1 = inlined_call_operand.vmem [shape: bf16[32,64], index: 1, kind: input, shape index: {}]   ;;  %s493_s2 = inlined_call_operand.vmem [shape: f32[1,64], index: 2, kind: input, shape index: {}]   ;;  %s494_s3 = inlined_call_operand.vmem [shape: bf16[64,32], index: 3, kind: input, shape index: {}]   ;;  %s495_s4 = inlined_call_operand.vmem [shape: f32[1,32], index: 4, kind: input, shape index: {}]   ;;  %s496_s5 = inlined_call_operand.vmem [shape: f32[1,32], index: 5, kind: input, shape index: {}]   ;;  %s497_s6 = inlined_call_operand.vmem [shape: f32[1,32], index: 6, kind: input, shape index: {}]   ;;  %s498_s7 = inlined_call_operand.hbm [shape: f32[16,32], index: 7, kind: output, shape index: {}]  }
   0x1   :  { %v326_v0 = vld [vmem:[%s492_s1 + $0x8] sm:$0xff]  ;;  %v325_v1 = vld [vmem:[%s492_s1] sm:$0xff] }
   0x2   :  { %v428_v2 = vld [vmem:[%s491_s0] sm:$0xff]  ;;  %v433_v3 = vld [vmem:[%s491_s0 + $0x8] sm:$0xff]  ;;  %61 = vmatpush.bf16.msra.mxu0 %v326_v0 }
   0x3   :  { %12 = vsyncpa [#allocation3], 0  ;;  %v30_v4 = vpack.c.bf16 %v433_v3, %v428_v2  ;;  %vm51_vm0 = vcmask 261120   ;;  %v335_v5 = vld [vmem:[%s493_s2] ss:$0 sm:$0xff]  ;;  %v330_v24 = vld [vmem:[%s494_s3 + $0x18] sm:$0xff] }
   0x4   :  { %202 = vmatpush.bf16.msra.mxu1 %v330_v24  ;;  %v329_v32 = vld [vmem:[%s494_s3 + $0x10] sm:$0xff]  ;;  %v328_v40 = vld [vmem:[%s494_s3 + $0x8] sm:$0xff]  ;;  %v327_v46 = vld [vmem:[%s494_s3] sm:$0xff]  ;;  %vm194_vm9 = vcmask 523264   ;;  %s285_s23 = sshll.u32 %s498_s7, 4  ;;  %s378_s24 = smov 8   ;;  %s286_s23 = int_to_ptr.hbm [resolvable:$true] %s285_s23 }
   0x6   :  { %62 = vmatpush.bf16.msra.mxu0 %v325_v1 }
   0x8   :  { %203 = vmatpush.bf16.msra.mxu1 %v329_v32 }
   0x9   :  { %305 = vmatmul.msk.bf16.vlgmr.msra.gmra.mxu0 %vm51_vm0, %v30_v4 }
   0xc   :  { %204 = vmatpush.bf16.msra.mxu1 %v328_v40  ;;  %v375_v40 = vmov 32.0  }
  0x10   :  { %205 = vmatpush.bf16.msra.mxu1 %v327_v46 }
  0x86   :  { %v64_v6 = vpop.f32.mrf.mxu0 }
  0x87   :  { %v441_v7 = vadd.f32 %v335_v5, %v64_v6 }
  0x89   :  { %v444_v8 = vmul.f32 0.70710677, %v441_v7 }
  0x8b   :  { %v73_v9 = vmul.f32 %v444_v8, %v444_v8 }
  0x8d   :  { %v74_v10 = vmin.f32 %v73_v9, 16.0 }
  0x8e   :  { %v66_v11 = vpop.f32.mrf.mxu0 }
  0x8f   :  { %v75_v12 = vmul.f32 2.1237322e-06, %v74_v10  ;;  %v86_v13 = vmul.f32 3.8918573e-05, %v74_v10  ;;  %v448_v14 = vadd.f32 %v335_v5, %v66_v11 }
  0x91   :  { %v76_v15 = vadd.f32 0.00028619796, %v75_v12  ;;  %v87_v16 = vadd.f32 0.001143296, %v86_v13  ;;  %v451_v17 = vmul.f32 0.70710677, %v448_v14 }
  0x93   :  { %v88_v18 = vmul.f32 %v87_v16, %v74_v10  ;;  %v113_v19 = vmul.f32 %v451_v17, %v451_v17  ;;  %v77_v20 = vmul.f32 %v76_v15, %v74_v10 }
  0x95   :  { %v89_v21 = vadd.f32 0.014752088, %v88_v18  ;;  %v114_v22 = vmin.f32 %v113_v19, 16.0  ;;  %v78_v27 = vadd.f32 0.0036580483, %v77_v20 }
  0x97   :  { %v90_v23 = vmul.f32 %v89_v21, %v74_v10  ;;  %v115_v25 = vmul.f32 2.1237322e-06, %v114_v22  ;;  %v126_v26 = vmul.f32 3.8918573e-05, %v114_v22  ;;  %v79_v35 = vmul.f32 %v78_v27, %v74_v10 }
  0x99   :  { %v91_v28 = vadd.f32 0.112945676, %v90_v23  ;;  %v116_v29 = vadd.f32 0.00028619796, %v115_v25  ;;  %v127_v30 = vadd.f32 0.001143296, %v126_v26 }
  0x9a   :  { %v80_v42 = vadd.f32 0.05243302, %v79_v35 }
  0x9b   :  { %v92_v31 = vmul.f32 %v91_v28, %v74_v10  ;;  %v117_v33 = vmul.f32 %v116_v29, %v114_v22  ;;  %v128_v34 = vmul.f32 %v127_v30, %v114_v22  ;;  %v69_v28 = vmul.f32 0.5, %v441_v7 }
  0x9c   :  { %v81_v48 = vmul.f32 %v80_v42, %v74_v10  ;;  %v70_v29 = vmul.f32 0.5, %v448_v14 }
  0x9d   :  { %v93_v36 = vadd.f32 0.4994258, %v92_v31  ;;  %v118_v37 = vadd.f32 0.0036580483, %v117_v33  ;;  %v129_v38 = vadd.f32 0.014752088, %v128_v34 }
  0x9e   :  { %v82_v53 = vadd.f32 0.18741608, %v81_v48 }
  0x9f   :  { %v94_v39 = vmul.f32 %v93_v36, %v74_v10  ;;  %v130_v41 = vmul.f32 %v129_v38, %v114_v22  ;;  %v119_v44 = vmul.f32 %v118_v37, %v114_v22 }
  0xa0   :  { %v83_v58 = vmul.f32 %v82_v53, %v74_v10 }
  0xa1   :  { %v95_v43 = vadd.f32 1.0, %v94_v39  ;;  %v131_v45 = vadd.f32 0.112945676, %v130_v41  ;;  %v120_v49 = vadd.f32 0.05243302, %v119_v44 }
  0xa2   :  { %v84_v0 = vadd.f32 1.1283791, %v83_v58 }
  0xa3   :  { %339 = vrcp.f32 %v95_v43  ;;  %v132_v47 = vmul.f32 %v131_v45, %v114_v22  ;;  %v121_v55 = vmul.f32 %v120_v49, %v114_v22  ;;  %v107_v60 = vand.u32 2147483648, %v95_v43 }
  0xa4   :  { %v105_v62 = vand.u32 2147483647, %v95_v43  ;;  %vm101_vm2 = vweird.f32 %v95_v43  ;;  %v85_v12 = vmul.f32 %v84_v0, %v444_v8 }
  0xa5   :  { %v133_v50 = vadd.f32 0.4994258, %v132_v47  ;;  %v122_v61 = vadd.f32 0.18741608, %v121_v55  ;;  %v108_v5 = vor.u32 1.1754944e-38, %v107_v60 }
  0xa6   :  { %vm106_vm4 = vcmp.eq.f32.partialorder %v105_v62, 8.507059e+37 }
  0xa7   :  { %v134_v51 = vmul.f32 %v133_v50, %v114_v22  ;;  %v123_v6 = vmul.f32 %v122_v61, %v114_v22 }
  0xa9   :  { %v340_v52 = vpop.eup %339  ;;  %v135_v56 = vadd.f32 1.0, %v134_v51  ;;  %v124_v10 = vadd.f32 1.1283791, %v123_v6 }
  0xaa   :  { %v97_v54 = vmul.f32 %v340_v52, %v95_v43  ;;  %vm102_vm1 = vweird.f32 %v340_v52 }
  0xab   :  { %341 = vrcp.f32 %v135_v56  ;;  %vm103_vm3 = vmor %vm101_vm2, %vm102_vm1  ;;  %v147_v15 = vand.u32 2147483648, %v135_v56  ;;  %v145_v19 = vand.u32 2147483647, %v135_v56  ;;  %vm141_vm6 = vweird.f32 %v135_v56 }
  0xac   :  { %v98_v57 = vsub.f32 1.0, %v97_v54  ;;  %v125_v24 = vmul.f32 %v124_v10, %v451_v17  ;;  %v336_v17 = vld [vmem:[%s495_s4] ss:$0 sm:$0xff]  ;;  %343 = vrcp.f32 %v375_v40 }
  0xad   :  { %v148_v21 = vor.u32 1.1754944e-38, %v147_v15  ;;  %vm146_vm8 = vcmp.eq.f32.partialorder %v145_v19, 8.507059e+37  ;;  %v338_v10 = vld [vmem:[%s497_s6] ss:$0 sm:$0xff]  ;;  %s377_s6 = smov 128  }
  0xae   :  { %v99_v59 = vmul.f32 %v340_v52, %v98_v57 }
  0xb0   :  { %v100_v63 = vadd.f32 %v340_v52, %v99_v59 }
  0xb1   :  { %v342_v1 = vpop.eup %341 }
  0xb2   :  { %v104_v4 = vsel %vm103_vm3, %v340_v52, %v100_v63  ;;  %v137_v9 = vmul.f32 %v342_v1, %v135_v56  ;;  %vm142_vm5 = vweird.f32 %v342_v1  ;;  %v344_v41 = vpop.eup %343 }
  0xb3   :  { %v109_v11 = vsel %vm106_vm4, %v108_v5, %v104_v4  ;;  %vm143_vm7 = vmor %vm141_vm6, %vm142_vm5  ;;  %v221_v42 = vmul.f32 32.0, %v344_v41  ;;  %vm225_vm10 = vweird.f32 %v344_v41  ;;  %v337_v5 = vld [vmem:[%s496_s5] ss:$0 sm:$0xff]  ;;  %s376_s5 = smov [#allocation2]  }
  0xb4   :  { %v138_v13 = vsub.f32 1.0, %v137_v9  ;;  %v110_v16 = vmul.f32 %v109_v11, %v85_v12  ;;  %s283_s20 = sshll.u32 %s376_s5, 4  ;;  %s284_s20 = int_to_ptr.vmem [resolvable:$true] %s283_s20 }
  0xb5   :  { %v222_v43 = vsub.f32 1.0, %v221_v42 }
  0xb6   :  { %v139_v18 = vmul.f32 %v342_v1, %v138_v13  ;;  %v306_v23 = vclamps-f32 %v110_v16, 1.0 }
  0xb7   :  { %v223_v44 = vmul.f32 %v344_v41, %v222_v43 }
  0xb8   :  { %v140_v20 = vadd.f32 %v342_v1, %v139_v18  ;;  %v153_v27 = vadd.f32 1.0, %v306_v23 }
  0xb9   :  { %v224_v45 = vadd.f32 %v344_v41, %v223_v44 }
  0xba   :  { %v144_v22 = vsel %vm143_vm7, %v342_v1, %v140_v20  ;;  %v155_v31 = vmul.f32 %v153_v27, %v69_v28 }
  0xbb   :  { %v149_v25 = vsel %vm146_vm8, %v148_v21, %v144_v22  ;;  %v226_v46 = vsel %vm225_vm10, %v344_v41, %v224_v45 }
  0xbc   :  { %v150_v26 = vmul.f32 %v149_v25, %v125_v24 }
  0xbe   :  { %v307_v8 = vclamps-f32 %v150_v26, 1.0 }
  0xc0   :  { %v154_v30 = vadd.f32 1.0, %v307_v8 }
  0xc2   :  { %v156_v32 = vmul.f32 %v154_v30, %v70_v29 }
  0xc4   :  { %v157_v33 = vpack.c.bf16 %v156_v32, %v155_v31 }
  0xc6   :  { %324 = vmatmul.msk.bf16.vlgmr.msra.gmra.mxu1 %vm194_vm9, %v157_v33 }
 0x143   :  { %v207_v34 = vpop.f32.mrf.mxu1 }
 0x144   :  { %v208_v35 = vadd.f32 %v336_v17, %v207_v34 }
 0x146   :  { %v212_v36 = vadd.f32 %v208_v35, %v428_v2 }
 0x148   :  { %v214_v37 = vsel %vm51_vm0, %v212_v36, 0.0 }
 0x149   :  { %215 = vadd.xlane.f32.xlu0 %v214_v37 }
 0x14b   :  { %v209_v7 = vpop.f32.mrf.mxu1 }
 0x14c   :  { %v210_v38 = vadd.f32 %v336_v17, %v209_v7 }
 0x14e   :  { %v213_v14 = vadd.f32 %v210_v38, %v433_v3 }
 0x150   :  { %v217_v39 = vsel %vm51_vm0, %v213_v14, 0.0 }
 0x151   :  { %218 = vadd.xlane.f32.xlu0 %v217_v39 }
 0x1bc   :  { %v216_v2 = vpop.xlane.xlu0 %215 }
 0x1bd   :  { %v227_v47 = vmul.f32 %v226_v46, %v216_v2 }
 0x1bf   :  { %v229_v48 = vsub.f32 %v212_v36, %v227_v47 }
 0x1c1   :  { %v231_v49 = vmul.f32 %v229_v48, %v229_v48 }
 0x1c3   :  { %v233_v50 = vsel %vm51_vm0, %v231_v49, 0.0 }
 0x1c4   :  { %234 = vadd.xlane.f32.xlu1 %v233_v50  ;;  %v219_v3 = vpop.xlane.xlu0 %218 }
 0x1c5   :  { %v228_v51 = vmul.f32 %v226_v46, %v219_v3 }
 0x1c7   :  { %v230_v52 = vsub.f32 %v213_v14, %v228_v51 }
 0x1c9   :  { %v232_v53 = vmul.f32 %v230_v52, %v230_v52 }
 0x1cb   :  { %v236_v54 = vsel %vm51_vm0, %v232_v53, 0.0 }
 0x1cc   :  { %237 = vadd.xlane.f32.xlu1 %v236_v54 }
 0x237   :  { %v235_v55 = vpop.xlane.xlu1 %234 }
 0x238   :  { %v239_v56 = vmul.f32 %v235_v55, %v226_v46 }
 0x23a   :  { %v242_v57 = vadd.f32 1e-05, %v239_v56 }
 0x23c   :  { %345 = vrsqrt.f32 %v242_v57  ;;  %vm250_vm12 = vweird.f32 %v242_v57 }
 0x23f   :  { %v238_v58 = vpop.xlane.xlu1 %237 }
 0x240   :  { %v240_v59 = vmul.f32 %v238_v58, %v226_v46 }
 0x242   :  { %v346_v60 = vpop.eup %345  ;;  %v243_v61 = vadd.f32 1e-05, %v240_v59 }
 0x243   :  { %v245_v62 = vmul.f32 %v346_v60, %v242_v57  ;;  %vm251_vm11 = vweird.f32 %v346_v60 }
 0x244   :  { %347 = vrsqrt.f32 %v243_v61  ;;  %vm252_vm13 = vmor %vm250_vm12, %vm251_vm11  ;;  %vm260_vm15 = vweird.f32 %v243_v61 }
 0x245   :  { %v246_v63 = vmul.f32 %v346_v60, %v245_v62 }
 0x247   :  { %v247_v0 = vmul.f32 0.5, %v246_v63 }
 0x249   :  { %v248_v1 = vsub.f32 1.5, %v247_v0 }
 0x24a   :  { %v348_v4 = vpop.eup %347 }
 0x24b   :  { %v249_v6 = vmul.f32 %v346_v60, %v248_v1  ;;  %v255_v9 = vmul.f32 %v348_v4, %v243_v61  ;;  %vm261_vm14 = vweird.f32 %v348_v4 }
 0x24c   :  { %vm262_vm1 = vmor %vm260_vm15, %vm261_vm14 }
 0x24d   :  { %v253_v11 = vsel %vm252_vm13, %v346_v60, %v249_v6  ;;  %v256_v12 = vmul.f32 %v348_v4, %v255_v9 }
 0x24e   :  { %v267_v13 = vmul.f32 %v337_v5, %v253_v11 }
 0x24f   :  { %v257_v15 = vmul.f32 0.5, %v256_v12 }
 0x250   :  { %v269_v16 = vmul.f32 %v267_v13, %v229_v48 }
 0x251   :  { %v258_v18 = vsub.f32 1.5, %v257_v15 }
 0x252   :  { %v275_v19 = vadd.f32 %v338_v10, %v269_v16 }
 0x253   :  { %v259_v20 = vmul.f32 %v348_v4, %v258_v18 }
 0x254   :  { %277 = vst.msk [vmem:[#allocation2] sm:$0xff] %vm51_vm0, %v275_v19 }
 0x255   :  { %v263_v21 = vsel %vm262_vm1, %v348_v4, %v259_v20 }
 0x256   :  { %v268_v23 = vmul.f32 %v337_v5, %v263_v21 }
 0x258   :  { %v270_v24 = vmul.f32 %v268_v23, %v230_v52 }
 0x25a   :  { %v276_v22 = vadd.f32 %v338_v10, %v270_v24 }
 0x25c   :  { %278 = vst.msk [vmem:[#allocation2 + $0x8] sm:$0xff] %vm51_vm0, %v276_v22 }
 0x25d   :  { %291 = dma.vmem_to_hbm [thread:$0]  %s284_s20, 256, %s286_s23, [#allocation3], %s377_s6, %s377_s6, %s378_s24  }
 0x25e   :  { %373 = dma.done.wait [#allocation3], 256  }
 0x25f   :  { %374 = vsyncadd [#allocation3], 4294967040 }
 0x260   :  { %296 = vsyncpa [#allocation3], 1 }

// kernel: tpu_custom_call.1
= control target key start
LH: loop header
LB: loop body
LE: loop exit
PB: predicated region body
PF: predicated region fallthrough
CT: control target
= control target key end

     0   :  { %s491_s0 = inlined_call_operand.vmem [shape: f32[16,32], index: 0, kind: input, shape index: {}]   ;;  %s492_s1 = inlined_call_operand.vmem [shape: bf16[32,64], index: 1, kind: input, shape index: {}]   ;;  %s493_s2 = inlined_call_operand.vmem [shape: f32[1,64], index: 2, kind: input, shape index: {}]   ;;  %s494_s3 = inlined_call_operand.vmem [shape: bf16[64,32], index: 3, kind: input, shape index: {}]   ;;  %s495_s4 = inlined_call_operand.vmem [shape: f32[1,32], index: 4, kind: input, shape index: {}]   ;;  %s496_s5 = inlined_call_operand.vmem [shape: f32[1,32], index: 5, kind: input, shape index: {}]   ;;  %s497_s6 = inlined_call_operand.vmem [shape: f32[1,32], index: 6, kind: input, shape index: {}]   ;;  %s498_s7 = inlined_call_operand.hbm [shape: f32[16,32], index: 7, kind: output, shape index: {}]  }
   0x1   :  { %v326_v0 = vld [vmem:[%s492_s1 + $0x8] sm:$0xff]  ;;  %v325_v1 = vld [vmem:[%s492_s1] sm:$0xff] }
   0x2   :  { %v428_v2 = vld [vmem:[%s491_s0] sm:$0xff]  ;;  %v433_v3 = vld [vmem:[%s491_s0 + $0x8] sm:$0xff]  ;;  %61 = vmatpush.bf16.msra.mxu0 %v326_v0 }
   0x3   :  { %12 = vsyncpa [#allocation3], 0  ;;  %v30_v4 = vpack.c.bf16 %v433_v3, %v428_v2  ;;  %vm51_vm0 = vcmask 261120   ;;  %v335_v5 = vld [vmem:[%s493_s2] ss:$0 sm:$0xff]  ;;  %v330_v24 = vld [vmem:[%s494_s3 + $0x18] sm:$0xff] }
   0x4   :  { %202 = vmatpush.bf16.msra.mxu1 %v330_v24  ;;  %v329_v32 = vld [vmem:[%s494_s3 + $0x10] sm:$0xff]  ;;  %v328_v40 = vld [vmem:[%s494_s3 + $0x8] sm:$0xff]  ;;  %v327_v46 = vld [vmem:[%s494_s3] sm:$0xff]  ;;  %vm194_vm9 = vcmask 523264   ;;  %s285_s23 = sshll.u32 %s498_s7, 4  ;;  %s378_s24 = smov 8   ;;  %s286_s23 = int_to_ptr.hbm [resolvable:$true] %s285_s23 }
   0x6   :  { %62 = vmatpush.bf16.msra.mxu0 %v325_v1 }
   0x8   :  { %203 = vmatpush.bf16.msra.mxu1 %v329_v32 }
   0x9   :  { %305 = vmatmul.msk.bf16.vlgmr.msra.gmra.mxu0 %vm51_vm0, %v30_v4 }
   0xc   :  { %204 = vmatpush.bf16.msra.mxu1 %v328_v40  ;;  %v375_v40 = vmov 32.0  }
  0x10   :  { %205 = vmatpush.bf16.msra.mxu1 %v327_v46 }
  0x86   :  { %v64_v6 = vpop.f32.mrf.mxu0 }
  0x87   :  { %v441_v7 = vadd.f32 %v335_v5, %v64_v6 }
  0x89   :  { %v444_v8 = vmul.f32 0.70710677, %v441_v7 }
  0x8b   :  { %v73_v9 = vmul.f32 %v444_v8, %v444_v8 }
  0x8d   :  { %v74_v10 = vmin.f32 %v73_v9, 16.0 }
  0x8e   :  { %v66_v11 = vpop.f32.mrf.mxu0 }
  0x8f   :  { %v75_v12 = vmul.f32 2.1237322e-06, %v74_v10  ;;  %v86_v13 = vmul.f32 3.8918573e-05, %v74_v10  ;;  %v448_v14 = vadd.f32 %v335_v5, %v66_v11 }
  0x91   :  { %v76_v15 = vadd.f32 0.00028619796, %v75_v12  ;;  %v87_v16 = vadd.f32 0.001143296, %v86_v13  ;;  %v451_v17 = vmul.f32 0.70710677, %v448_v14 }
  0x93   :  { %v88_v18 = vmul.f32 %v87_v16, %v74_v10  ;;  %v113_v19 = vmul.f32 %v451_v17, %v451_v17  ;;  %v77_v20 = vmul.f32 %v76_v15, %v74_v10 }
  0x95   :  { %v89_v21 = vadd.f32 0.014752088, %v88_v18  ;;  %v114_v22 = vmin.f32 %v113_v19, 16.0  ;;  %v78_v27 = vadd.f32 0.0036580483, %v77_v20 }
  0x97   :  { %v90_v23 = vmul.f32 %v89_v21, %v74_v10  ;;  %v115_v25 = vmul.f32 2.1237322e-06, %v114_v22  ;;  %v126_v26 = vmul.f32 3.8918573e-05, %v114_v22  ;;  %v79_v35 = vmul.f32 %v78_v27, %v74_v10 }
  0x99   :  { %v91_v28 = vadd.f32 0.112945676, %v90_v23  ;;  %v116_v29 = vadd.f32 0.00028619796, %v115_v25  ;;  %v127_v30 = vadd.f32 0.001143296, %v126_v26 }
  0x9a   :  { %v80_v42 = vadd.f32 0.05243302, %v79_v35 }
  0x9b   :  { %v92_v31 = vmul.f32 %v91_v28, %v74_v10  ;;  %v117_v33 = vmul.f32 %v116_v29, %v114_v22  ;;  %v128_v34 = vmul.f32 %v127_v30, %v114_v22  ;;  %v69_v28 = vmul.f32 0.5, %v441_v7 }
  0x9c   :  { %v81_v48 = vmul.f32 %v80_v42, %v74_v10  ;;  %v70_v29 = vmul.f32 0.5, %v448_v14 }
  0x9d   :  { %v93_v36 = vadd.f32 0.4994258, %v92_v31  ;;  %v118_v37 = vadd.f32 0.0036580483, %v117_v33  ;;  %v129_v38 = vadd.f32 0.014752088, %v128_v34 }
  0x9e   :  { %v82_v53 = vadd.f32 0.18741608, %v81_v48 }
  0x9f   :  { %v94_v39 = vmul.f32 %v93_v36, %v74_v10  ;;  %v130_v41 = vmul.f32 %v129_v38, %v114_v22  ;;  %v119_v44 = vmul.f32 %v118_v37, %v114_v22 }
  0xa0   :  { %v83_v58 = vmul.f32 %v82_v53, %v74_v10 }
  0xa1   :  { %v95_v43 = vadd.f32 1.0, %v94_v39  ;;  %v131_v45 = vadd.f32 0.112945676, %v130_v41  ;;  %v120_v49 = vadd.f32 0.05243302, %v119_v44 }
  0xa2   :  { %v84_v0 = vadd.f32 1.1283791, %v83_v58 }
  0xa3   :  { %339 = vrcp.f32 %v95_v43  ;;  %v132_v47 = vmul.f32 %v131_v45, %v114_v22  ;;  %v121_v55 = vmul.f32 %v120_v49, %v114_v22  ;;  %v107_v60 = vand.u32 2147483648, %v95_v43 }
  0xa4   :  { %v105_v62 = vand.u32 2147483647, %v95_v43  ;;  %vm101_vm2 = vweird.f32 %v95_v43  ;;  %v85_v12 = vmul.f32 %v84_v0, %v444_v8 }
  0xa5   :  { %v133_v50 = vadd.f32 0.4994258, %v132_v47  ;;  %v122_v61 = vadd.f32 0.18741608, %v121_v55  ;;  %v108_v5 = vor.u32 1.1754944e-38, %v107_v60 }
  0xa6   :  { %vm106_vm4 = vcmp.eq.f32.partialorder %v105_v62, 8.507059e+37 }
  0xa7   :  { %v134_v51 = vmul.f32 %v133_v50, %v114_v22  ;;  %v123_v6 = vmul.f32 %v122_v61, %v114_v22 }
  0xa9   :  { %v340_v52 = vpop.eup %339  ;;  %v135_v56 = vadd.f32 1.0, %v134_v51  ;;  %v124_v10 = vadd.f32 1.1283791, %v123_v6 }
  0xaa   :  { %v97_v54 = vmul.f32 %v340_v52, %v95_v43  ;;  %vm102_vm1 = vweird.f32 %v340_v52 }
  0xab   :  { %341 = vrcp.f32 %v135_v56  ;;  %vm103_vm3 = vmor %vm101_vm2, %vm102_vm1  ;;  %v147_v15 = vand.u32 2147483648, %v135_v56  ;;  %v145_v19 = vand.u32 2147483647, %v135_v56  ;;  %vm141_vm6 = vweird.f32 %v135_v56 }
  0xac   :  { %v98_v57 = vsub.f32 1.0, %v97_v54  ;;  %v125_v24 = vmul.f32 %v124_v10, %v451_v17  ;;  %v336_v17 = vld [vmem:[%s495_s4] ss:$0 sm:$0xff]  ;;  %343 = vrcp.f32 %v375_v40 }
  0xad   :  { %v148_v21 = vor.u32 1.1754944e-38, %v147_v15  ;;  %vm146_vm8 = vcmp.eq.f32.partialorder %v145_v19, 8.507059e+37  ;;  %v338_v10 = vld [vmem:[%s497_s6] ss:$0 sm:$0xff]  ;;  %s377_s6 = smov 128  }
  0xae   :  { %v99_v59 = vmul.f32 %v340_v52, %v98_v57 }
  0xb0   :  { %v100_v63 = vadd.f32 %v340_v52, %v99_v59 }
  0xb1   :  { %v342_v1 = vpop.eup %341 }
  0xb2   :  { %v104_v4 = vsel %vm103_vm3, %v340_v52, %v100_v63  ;;  %v137_v9 = vmul.f32 %v342_v1, %v135_v56  ;;  %vm142_vm5 = vweird.f32 %v342_v1  ;;  %v344_v41 = vpop.eup %343 }
  0xb3   :  { %v109_v11 = vsel %vm106_vm4, %v108_v5, %v104_v4  ;;  %vm143_vm7 = vmor %vm141_vm6, %vm142_vm5  ;;  %v221_v42 = vmul.f32 32.0, %v344_v41  ;;  %vm225_vm10 = vweird.f32 %v344_v41  ;;  %v337_v5 = vld [vmem:[%s496_s5] ss:$0 sm:$0xff]  ;;  %s376_s5 = smov [#allocation2]  }
  0xb4   :  { %v138_v13 = vsub.f32 1.0, %v137_v9  ;;  %v110_v16 = vmul.f32 %v109_v11, %v85_v12  ;;  %s283_s20 = sshll.u32 %s376_s5, 4  ;;  %s284_s20 = int_to_ptr.vmem [resolvable:$true] %s283_s20 }
  0xb5   :  { %v222_v43 = vsub.f32 1.0, %v221_v42 }
  0xb6   :  { %v139_v18 = vmul.f32 %v342_v1, %v138_v13  ;;  %v306_v23 = vclamps-f32 %v110_v16, 1.0 }
  0xb7   :  { %v223_v44 = vmul.f32 %v344_v41, %v222_v43 }
  0xb8   :  { %v140_v20 = vadd.f32 %v342_v1, %v139_v18  ;;  %v153_v27 = vadd.f32 1.0, %v306_v23 }
  0xb9   :  { %v224_v45 = vadd.f32 %v344_v41, %v223_v44 }
  0xba   :  { %v144_v22 = vsel %vm143_vm7, %v342_v1, %v140_v20  ;;  %v155_v31 = vmul.f32 %v153_v27, %v69_v28 }
  0xbb   :  { %v149_v25 = vsel %vm146_vm8, %v148_v21, %v144_v22  ;;  %v226_v46 = vsel %vm225_vm10, %v344_v41, %v224_v45 }
  0xbc   :  { %v150_v26 = vmul.f32 %v149_v25, %v125_v24 }
  0xbe   :  { %v307_v8 = vclamps-f32 %v150_v26, 1.0 }
  0xc0   :  { %v154_v30 = vadd.f32 1.0, %v307_v8 }
  0xc2   :  { %v156_v32 = vmul.f32 %v154_v30, %v70_v29 }
  0xc4   :  { %v157_v33 = vpack.c.bf16 %v156_v32, %v155_v31 }
  0xc6   :  { %324 = vmatmul.msk.bf16.vlgmr.msra.gmra.mxu1 %vm194_vm9, %v157_v33 }
 0x143   :  { %v207_v34 = vpop.f32.mrf.mxu1 }
 0x144   :  { %v208_v35 = vadd.f32 %v336_v17, %v207_v34 }
 0x146   :  { %v212_v36 = vadd.f32 %v208_v35, %v428_v2 }
 0x148   :  { %v214_v37 = vsel %vm51_vm0, %v212_v36, 0.0 }
 0x149   :  { %215 = vadd.xlane.f32.xlu0 %v214_v37 }
 0x14b   :  { %v209_v7 = vpop.f32.mrf.mxu1 }
 0x14c   :  { %v210_v38 = vadd.f32 %v336_v17, %v209_v7 }
 0x14e   :  { %v213_v14 = vadd.f32 %v210_v38, %v433_v3 }
 0x150   :  { %v217_v39 = vsel %vm51_vm0, %v213_v14, 0.0 }
 0x151   :  { %218 = vadd.xlane.f32.xlu0 %v217_v39 }
 0x1bc   :  { %v216_v2 = vpop.xlane.xlu0 %215 }
 0x1bd   :  { %v227_v47 = vmul.f32 %v226_v46, %v216_v2 }
 0x1bf   :  { %v229_v48 = vsub.f32 %v212_v36, %v227_v47 }
 0x1c1   :  { %v231_v49 = vmul.f32 %v229_v48, %v229_v48 }
 0x1c3   :  { %v233_v50 = vsel %vm51_vm0, %v231_v49, 0.0 }
 0x1c4   :  { %234 = vadd.xlane.f32.xlu1 %v233_v50  ;;  %v219_v3 = vpop.xlane.xlu0 %218 }
 0x1c5   :  { %v228_v51 = vmul.f32 %v226_v46, %v219_v3 }
 0x1c7   :  { %v230_v52 = vsub.f32 %v213_v14, %v228_v51 }
 0x1c9   :  { %v232_v53 = vmul.f32 %v230_v52, %v230_v52 }
 0x1cb   :  { %v236_v54 = vsel %vm51_vm0, %v232_v53, 0.0 }
 0x1cc   :  { %237 = vadd.xlane.f32.xlu1 %v236_v54 }
 0x237   :  { %v235_v55 = vpop.xlane.xlu1 %234 }
 0x238   :  { %v239_v56 = vmul.f32 %v235_v55, %v226_v46 }
 0x23a   :  { %v242_v57 = vadd.f32 1e-05, %v239_v56 }
 0x23c   :  { %345 = vrsqrt.f32 %v242_v57  ;;  %vm250_vm12 = vweird.f32 %v242_v57 }
 0x23f   :  { %v238_v58 = vpop.xlane.xlu1 %237 }
 0x240   :  { %v240_v59 = vmul.f32 %v238_v58, %v226_v46 }
 0x242   :  { %v346_v60 = vpop.eup %345  ;;  %v243_v61 = vadd.f32 1e-05, %v240_v59 }
 0x243   :  { %v245_v62 = vmul.f32 %v346_v60, %v242_v57  ;;  %vm251_vm11 = vweird.f32 %v346_v60 }
 0x244   :  { %347 = vrsqrt.f32 %v243_v61  ;;  %vm252_vm13 = vmor %vm250_vm12, %vm251_vm11  ;;  %vm260_vm15 = vweird.f32 %v243_v61 }
 0x245   :  { %v246_v63 = vmul.f32 %v346_v60, %v245_v62 }
 0x247   :  { %v247_v0 = vmul.f32 0.5, %v246_v63 }
 0x249   :  { %v248_v1 = vsub.f32 1.5, %v247_v0 }
 0x24a   :  { %v348_v4 = vpop.eup %347 }
 0x24b   :  { %v249_v6 = vmul.f32 %v346_v60, %v248_v1  ;;  %v255_v9 = vmul.f32 %v348_v4, %v243_v61  ;;  %vm261_vm14 = vweird.f32 %v348_v4 }
 0x24c   :  { %vm262_vm1 = vmor %vm260_vm15, %vm261_vm14 }
 0x24d   :  { %v253_v11 = vsel %vm252_vm13, %v346_v60, %v249_v6  ;;  %v256_v12 = vmul.f32 %v348_v4, %v255_v9 }
 0x24e   :  { %v267_v13 = vmul.f32 %v337_v5, %v253_v11 }
 0x24f   :  { %v257_v15 = vmul.f32 0.5, %v256_v12 }
 0x250   :  { %v269_v16 = vmul.f32 %v267_v13, %v229_v48 }
 0x251   :  { %v258_v18 = vsub.f32 1.5, %v257_v15 }
 0x252   :  { %v275_v19 = vadd.f32 %v338_v10, %v269_v16 }
 0x253   :  { %v259_v20 = vmul.f32 %v348_v4, %v258_v18 }
 0x254   :  { %277 = vst.msk [vmem:[#allocation2] sm:$0xff] %vm51_vm0, %v275_v19 }
 0x255   :  { %v263_v21 = vsel %vm262_vm1, %v348_v4, %v259_v20 }
 0x256   :  { %v268_v23 = vmul.f32 %v337_v5, %v263_v21 }
 0x258   :  { %v270_v24 = vmul.f32 %v268_v23, %v230_v52 }
 0x25a   :  { %v276_v22 = vadd.f32 %v338_v10, %v270_v24 }
 0x25c   :  { %278 = vst.msk [vmem:[#allocation2 + $0x8] sm:$0xff] %vm51_vm0, %v276_v22 }
 0x25d   :  { %291 = dma.vmem_to_hbm [thread:$0]  %s284_s20, 256, %s286_s23, [#allocation3], %s377_s6, %s377_s6, %s378_s24  }
 0x25e   :  { %373 = dma.done.wait [#allocation3], 256  }
 0x25f   :  { %374 = vsyncadd [#allocation3], 4294967040 }
 0x260   :  { %296 = vsyncpa [#allocation3], 1 }

</bundles_post_ra>
